<compile_context>
chip_gen: v5e
topology: v5e:2x2
jax: 0.10.0
libtpu: 0.0.40
codegen_flags: <defaults>
</compile_context>

<pallas_src>
import jax
import jax.numpy as jnp
from jax.experimental import pallas as pl
from jax.experimental.pallas import tpu as pltpu

SEQ = 8
BATCH = 2
INPUT = 1
HIDDEN = 50


def rnn_kernel(x_ref, whh_ref, params_ref, out_ref):
    """Single-invocation vanilla-RNN forward; everything VMEM-resident.

    x_ref      : (SEQ, BATCH)      input sequence (input_size == 1), f32
    whh_ref    : (HIDDEN, HIDDEN)  W_hh^T, f32
    params_ref : (4, HIDDEN)       row 0: W_ih^T (input_size == 1)
                                   row 1: b_ih + b_hh
                                   row 2: classifier weight row
                                   row 3: classifier bias (broadcast)
    out_ref    : (BATCH, 1)        sigmoid output
    """
    seq, batch = x_ref.shape
    hidden = whh_ref.shape[1]

    wih_row = params_ref[0:1, :]      # (1, H)
    b_row = params_ref[1:2, :]        # (1, H)
    wcls = params_ref[2:3, :]         # (1, H)
    bcls = params_ref[3:4, 0:1]       # (1, 1)

    whh = whh_ref[...]                # (H, H) loaded once, reused every step

    # Hoisted input projection (off the serial chain).  INPUT == 1, so this is
    # a VPU broadcast-multiply.  Kept as a register value: SEQ*BATCH*HIDDEN f32
    # is only ~8 padded vregs, no scratch round trip needed.
    xw = x_ref[...][:, :, None] * wih_row + b_row      # (SEQ, BATCH, HIDDEN)

    # Serial recurrence, fully unrolled with static step indices.  Only
    # h @ W_hh -> tanh sits on the strictly serial critical path.
    h = jnp.zeros((batch, hidden), jnp.float32)
    for t in range(seq):
        h = jnp.tanh(xw[t] + jnp.dot(h, whh, preferred_element_type=jnp.float32))

    # Classifier: single output unit -> VPU multiply + lane reduce (skip MXU).
    logits = jnp.sum(h * wcls, axis=-1, keepdims=True) + bcls
    out_ref[...] = jax.nn.sigmoid(logits)


def rnn_classifier(x, w_ih, w_hh, b_ih, b_hh, w_cls, b_cls):
    """x: (SEQ, BATCH, 1) float32 -> (BATCH, 1) float32."""
    seq, batch, inp = x.shape
    hidden = w_hh.shape[0]
    assert inp == 1, "module spec fixes input_size=1"

    # Parameter glue (transpose / bias fold / packing) stays in plain JAX.
    x2d = x.reshape(seq, batch).astype(jnp.float32)
    whh_t = w_hh.T.astype(jnp.float32)                  # (HIDDEN, HIDDEN)
    params = jnp.stack([
        w_ih.reshape(hidden),                           # W_ih^T (input_size==1)
        (b_ih + b_hh).reshape(hidden),                  # fused RNN bias
        w_cls.reshape(hidden),                          # classifier weights
        jnp.full((hidden,), b_cls.reshape(())[()]),     # classifier bias
    ]).astype(jnp.float32)                              # (4, HIDDEN)

    return pl.pallas_call(
        rnn_kernel,
        out_shape=jax.ShapeDtypeStruct((batch, 1), jnp.float32),
        grid_spec=pltpu.PrefetchScalarGridSpec(
            num_scalar_prefetch=0,
            grid=(1,),  # single invocation: whole problem fits in VMEM (<20 KB)
            in_specs=[
                pl.BlockSpec((seq, batch), lambda i: (0, 0)),
                pl.BlockSpec((hidden, hidden), lambda i: (0, 0)),
                pl.BlockSpec((4, hidden), lambda i: (0, 0)),
            ],
            out_specs=pl.BlockSpec((batch, 1), lambda i: (0, 0)),
        ),
        compiler_params=pltpu.CompilerParams(
            dimension_semantics=("arbitrary",)),
    )(x2d, whh_t, params)


if __name__ == "__main__":
    key = jax.random.PRNGKey(0)
    kx, k1, k2, k3, k4, k5, k6 = jax.random.split(key, 7)

    # Deterministic parameter init mimicking PyTorch's U(-1/sqrt(H), 1/sqrt(H)).
    bound = 1.0 / jnp.sqrt(jnp.float32(HIDDEN))
    w_ih = jax.random.uniform(k1, (HIDDEN, INPUT), jnp.float32, -bound, bound)
    w_hh = jax.random.uniform(k2, (HIDDEN, HIDDEN), jnp.float32, -bound, bound)
    b_ih = jax.random.uniform(k3, (HIDDEN,), jnp.float32, -bound, bound)
    b_hh = jax.random.uniform(k4, (HIDDEN,), jnp.float32, -bound, bound)
    w_cls = jax.random.uniform(k5, (1, HIDDEN), jnp.float32, -bound, bound)
    b_cls = jax.random.uniform(k6, (1,), jnp.float32, -bound, bound)

    x = jax.random.normal(kx, (SEQ, BATCH, INPUT), jnp.float32)

    out = rnn_classifier(x, w_ih, w_hh, b_ih, b_hh, w_cls, b_cls)
    out = jax.block_until_ready(out)
    assert out.shape == (BATCH, 1) and out.dtype == jnp.float32

    # Independent full-f32 reference (HIGHEST matmul precision), matching the
    # PyTorch nn.RNN + Linear + sigmoid forward pass.
    def ref(x):
        xw = x * w_ih.T + (b_ih + b_hh)                 # (SEQ, BATCH, HIDDEN)
        h = jnp.zeros((BATCH, HIDDEN), jnp.float32)
        for t in range(SEQ):
            h = jnp.tanh(xw[t] + jnp.dot(h, w_hh.T,
                                         preferred_element_type=jnp.float32,
                                         precision=jax.lax.Precision.HIGHEST))
        logits = jnp.sum(h * w_cls, axis=-1, keepdims=True) + b_cls
        return jax.nn.sigmoid(logits)

    # Tolerance covers MXU f32-matmul precision variation across TPU gens.
    assert jnp.allclose(out, ref(x), atol=2e-3, rtol=2e-3)
    print("KERNEL_OK")
</pallas_src>

<mosaic_0001>
module attributes {stable_mosaic.version = 11 : i64} {
  func.func @rnn_kernel(%arg0: i32, %arg1: memref<8x2xf32, #tpu.memory_space<vmem>>, %arg2: memref<50x50xf32, #tpu.memory_space<vmem>>, %arg3: memref<4x50xf32, #tpu.memory_space<vmem>>, %arg4: memref<2x1xf32, #tpu.memory_space<vmem>>) attributes {dimension_semantics = [#tpu.dimension_semantics<arbitrary>], iteration_bounds = array<i64: 1>, scalar_prefetch = 0 : i64, scratch_operands = 0 : i64, tpu.core_type = #tpu.core_type<tc>, window_params = [{pipeline_mode = #tpu.pipeline_mode<synchronous>, transform_indices = @transform_0, window_bounds = array<i64: 8, 2>}, {pipeline_mode = #tpu.pipeline_mode<synchronous>, transform_indices = @transform_1, window_bounds = array<i64: 50, 50>}, {pipeline_mode = #tpu.pipeline_mode<synchronous>, transform_indices = @transform_2, window_bounds = array<i64: 4, 50>}, {pipeline_mode = #tpu.pipeline_mode<synchronous>, transform_indices = @transform_3, window_bounds = array<i64: 2, 1>}]} {
    %c0 = arith.constant 0 : index
    %c0_0 = arith.constant 0 : index
    %0 = vector.load %arg3[%c0, %c0_0] : memref<4x50xf32, #tpu.memory_space<vmem>>, vector<1x50xf32>
    %c1 = arith.constant 1 : index
    %c0_1 = arith.constant 0 : index
    %1 = vector.load %arg3[%c1, %c0_1] : memref<4x50xf32, #tpu.memory_space<vmem>>, vector<1x50xf32>
    %c2 = arith.constant 2 : index
    %c0_2 = arith.constant 0 : index
    %2 = vector.load %arg3[%c2, %c0_2] : memref<4x50xf32, #tpu.memory_space<vmem>>, vector<1x50xf32>
    %c3 = arith.constant 3 : index
    %c0_3 = arith.constant 0 : index
    %3 = vector.load %arg3[%c3, %c0_3] : memref<4x50xf32, #tpu.memory_space<vmem>>, vector<1x1xf32>
    %c0_4 = arith.constant 0 : index
    %c0_5 = arith.constant 0 : index
    %4 = vector.load %arg2[%c0_4, %c0_5] : memref<50x50xf32, #tpu.memory_space<vmem>>, vector<50x50xf32>
    %c0_6 = arith.constant 0 : index
    %c0_7 = arith.constant 0 : index
    %5 = vector.load %arg1[%c0_6, %c0_7] : memref<8x2xf32, #tpu.memory_space<vmem>>, vector<8x2xf32>
    %6 = vector.shape_cast %5 : vector<8x2xf32> to vector<8x2x1xf32>
    %7 = vector.shape_cast %0 : vector<1x50xf32> to vector<1x1x50xf32>
    %8 = vector.broadcast %6 : vector<8x2x1xf32> to vector<8x2x50xf32>
    %9 = vector.broadcast %7 : vector<1x1x50xf32> to vector<8x2x50xf32>
    %10 = arith.mulf %8, %9 : vector<8x2x50xf32>
    %11 = vector.shape_cast %1 : vector<1x50xf32> to vector<1x1x50xf32>
    %12 = vector.broadcast %11 : vector<1x1x50xf32> to vector<8x2x50xf32>
    %13 = arith.addf %10, %12 : vector<8x2x50xf32>
    %cst = arith.constant 0.000000e+00 : f32
    %14 = vector.broadcast %cst : f32 to vector<2x50xf32>
    %15 = vector.extract_strided_slice %13 {offsets = [0, 0, 0], sizes = [1, 2, 50], strides = [1, 1, 1]} : vector<8x2x50xf32> to vector<1x2x50xf32>
    %16 = vector.shape_cast %15 : vector<1x2x50xf32> to vector<2x50xf32>
    %cst_8 = arith.constant dense<0.000000e+00> : vector<2x50xf32>
    %17 = tpu.matmul %14, %4, %cst_8 {dimension_numbers = #tpu.dot_dimension_numbers<[1], [0], [0], [1], [0, 0, 1, 1], [], []>} : vector<2x50xf32>, vector<50x50xf32>, vector<2x50xf32> -> vector<2x50xf32>
    %18 = arith.addf %16, %17 : vector<2x50xf32>
    %19 = math.tanh %18 : vector<2x50xf32>
    %20 = vector.extract_strided_slice %13 {offsets = [1, 0, 0], sizes = [1, 2, 50], strides = [1, 1, 1]} : vector<8x2x50xf32> to vector<1x2x50xf32>
    %21 = vector.shape_cast %20 : vector<1x2x50xf32> to vector<2x50xf32>
    %cst_9 = arith.constant dense<0.000000e+00> : vector<2x50xf32>
    %22 = tpu.matmul %19, %4, %cst_9 {dimension_numbers = #tpu.dot_dimension_numbers<[1], [0], [0], [1], [0, 0, 1, 1], [], []>} : vector<2x50xf32>, vector<50x50xf32>, vector<2x50xf32> -> vector<2x50xf32>
    %23 = arith.addf %21, %22 : vector<2x50xf32>
    %24 = math.tanh %23 : vector<2x50xf32>
    %25 = vector.extract_strided_slice %13 {offsets = [2, 0, 0], sizes = [1, 2, 50], strides = [1, 1, 1]} : vector<8x2x50xf32> to vector<1x2x50xf32>
    %26 = vector.shape_cast %25 : vector<1x2x50xf32> to vector<2x50xf32>
    %cst_10 = arith.constant dense<0.000000e+00> : vector<2x50xf32>
    %27 = tpu.matmul %24, %4, %cst_10 {dimension_numbers = #tpu.dot_dimension_numbers<[1], [0], [0], [1], [0, 0, 1, 1], [], []>} : vector<2x50xf32>, vector<50x50xf32>, vector<2x50xf32> -> vector<2x50xf32>
    %28 = arith.addf %26, %27 : vector<2x50xf32>
    %29 = math.tanh %28 : vector<2x50xf32>
    %30 = vector.extract_strided_slice %13 {offsets = [3, 0, 0], sizes = [1, 2, 50], strides = [1, 1, 1]} : vector<8x2x50xf32> to vector<1x2x50xf32>
    %31 = vector.shape_cast %30 : vector<1x2x50xf32> to vector<2x50xf32>
    %cst_11 = arith.constant dense<0.000000e+00> : vector<2x50xf32>
    %32 = tpu.matmul %29, %4, %cst_11 {dimension_numbers = #tpu.dot_dimension_numbers<[1], [0], [0], [1], [0, 0, 1, 1], [], []>} : vector<2x50xf32>, vector<50x50xf32>, vector<2x50xf32> -> vector<2x50xf32>
    %33 = arith.addf %31, %32 : vector<2x50xf32>
    %34 = math.tanh %33 : vector<2x50xf32>
    %35 = vector.extract_strided_slice %13 {offsets = [4, 0, 0], sizes = [1, 2, 50], strides = [1, 1, 1]} : vector<8x2x50xf32> to vector<1x2x50xf32>
    %36 = vector.shape_cast %35 : vector<1x2x50xf32> to vector<2x50xf32>
    %cst_12 = arith.constant dense<0.000000e+00> : vector<2x50xf32>
    %37 = tpu.matmul %34, %4, %cst_12 {dimension_numbers = #tpu.dot_dimension_numbers<[1], [0], [0], [1], [0, 0, 1, 1], [], []>} : vector<2x50xf32>, vector<50x50xf32>, vector<2x50xf32> -> vector<2x50xf32>
    %38 = arith.addf %36, %37 : vector<2x50xf32>
    %39 = math.tanh %38 : vector<2x50xf32>
    %40 = vector.extract_strided_slice %13 {offsets = [5, 0, 0], sizes = [1, 2, 50], strides = [1, 1, 1]} : vector<8x2x50xf32> to vector<1x2x50xf32>
    %41 = vector.shape_cast %40 : vector<1x2x50xf32> to vector<2x50xf32>
    %cst_13 = arith.constant dense<0.000000e+00> : vector<2x50xf32>
    %42 = tpu.matmul %39, %4, %cst_13 {dimension_numbers = #tpu.dot_dimension_numbers<[1], [0], [0], [1], [0, 0, 1, 1], [], []>} : vector<2x50xf32>, vector<50x50xf32>, vector<2x50xf32> -> vector<2x50xf32>
    %43 = arith.addf %41, %42 : vector<2x50xf32>
    %44 = math.tanh %43 : vector<2x50xf32>
    %45 = vector.extract_strided_slice %13 {offsets = [6, 0, 0], sizes = [1, 2, 50], strides = [1, 1, 1]} : vector<8x2x50xf32> to vector<1x2x50xf32>
    %46 = vector.shape_cast %45 : vector<1x2x50xf32> to vector<2x50xf32>
    %cst_14 = arith.constant dense<0.000000e+00> : vector<2x50xf32>
    %47 = tpu.matmul %44, %4, %cst_14 {dimension_numbers = #tpu.dot_dimension_numbers<[1], [0], [0], [1], [0, 0, 1, 1], [], []>} : vector<2x50xf32>, vector<50x50xf32>, vector<2x50xf32> -> vector<2x50xf32>
    %48 = arith.addf %46, %47 : vector<2x50xf32>
    %49 = math.tanh %48 : vector<2x50xf32>
    %50 = vector.extract_strided_slice %13 {offsets = [7, 0, 0], sizes = [1, 2, 50], strides = [1, 1, 1]} : vector<8x2x50xf32> to vector<1x2x50xf32>
    %51 = vector.shape_cast %50 : vector<1x2x50xf32> to vector<2x50xf32>
    %cst_15 = arith.constant dense<0.000000e+00> : vector<2x50xf32>
    %52 = tpu.matmul %49, %4, %cst_15 {dimension_numbers = #tpu.dot_dimension_numbers<[1], [0], [0], [1], [0, 0, 1, 1], [], []>} : vector<2x50xf32>, vector<50x50xf32>, vector<2x50xf32> -> vector<2x50xf32>
    %53 = arith.addf %51, %52 : vector<2x50xf32>
    %54 = math.tanh %53 : vector<2x50xf32>
    %55 = vector.broadcast %2 : vector<1x50xf32> to vector<2x50xf32>
    %56 = arith.mulf %54, %55 : vector<2x50xf32>
    %cst_16 = arith.constant dense<0.000000e+00> : vector<2xf32>
    %57 = vector.multi_reduction <add>, %56, %cst_16 [1] : vector<2x50xf32> to vector<2xf32>
    %58 = vector.shape_cast %57 : vector<2xf32> to vector<2x1xf32>
    %59 = vector.broadcast %3 : vector<1x1xf32> to vector<2x1xf32>
    %60 = arith.addf %58, %59 : vector<2x1xf32>
    %61 = arith.negf %60 : vector<2x1xf32>
    %62 = math.exp %61 : vector<2x1xf32>
    %cst_17 = arith.constant 1.000000e+00 : f32
    %63 = vector.broadcast %cst_17 : f32 to vector<2x1xf32>
    %64 = arith.addf %63, %62 : vector<2x1xf32>
    %65 = arith.divf %63, %64 : vector<2x1xf32>
    %c0_18 = arith.constant 0 : index
    %c0_19 = arith.constant 0 : index
    %66 = vector.load %arg4[%c0_18, %c0_19] : memref<2x1xf32, #tpu.memory_space<vmem>>, vector<2x1xf32>
    tpu.vector_store %arg4[%c0_18, %c0_19], %65 {strides = array<i32>} : memref<2x1xf32, #tpu.memory_space<vmem>>, vector<2x1xf32>,
    return
  }
  func.func @transform_0(%arg0: i32) -> (i32, i32) {
    %c0_i32 = arith.constant 0 : i32
    %c0_i32_0 = arith.constant 0 : i32
    %c0_i32_1 = arith.constant 0 : i32
    return %c0_i32, %c0_i32_0 : i32, i32
  }
  func.func @transform_1(%arg0: i32) -> (i32, i32) {
    %c0_i32 = arith.constant 0 : i32
    %c0_i32_0 = arith.constant 0 : i32
    %c0_i32_1 = arith.constant 0 : i32
    return %c0_i32, %c0_i32_0 : i32, i32
  }
  func.func @transform_2(%arg0: i32) -> (i32, i32) {
    %c0_i32 = arith.constant 0 : i32
    %c0_i32_0 = arith.constant 0 : i32
    %c0_i32_1 = arith.constant 0 : i32
    return %c0_i32, %c0_i32_0 : i32, i32
  }
  func.func @transform_3(%arg0: i32) -> (i32, i32) {
    %c0_i32 = arith.constant 0 : i32
    %c0_i32_0 = arith.constant 0 : i32
    %c0_i32_1 = arith.constant 0 : i32
    return %c0_i32, %c0_i32_0 : i32, i32
  }
}

</mosaic_0001>

<bundles_post_ra>
// kernel: tpu_custom_call.1
= control target key start
LH: loop header
LB: loop body
LE: loop exit
PB: predicated region body
PF: predicated region fallthrough
CT: control target
= control target key end

     0   :  { %8 = vsyncpa [#allocation3], 0  ;;  %s428_s15 = smov [#allocation2]   ;;  %s429_s17 = smov 128   ;;  %s518_s0 = inlined_call_operand.vmem [shape: f32[8,2], index: 0, kind: input, shape index: {}]   ;;  %s519_s1 = inlined_call_operand.hbm [shape: f32[50,50], index: 1, kind: input, shape index: {}]   ;;  %s520_s2 = inlined_call_operand.vmem [shape: f32[4,50], index: 2, kind: input, shape index: {}]   ;;  %s521_s3 = inlined_call_operand.vmem [shape: f32[2,1], index: 3, kind: output, shape index: {}]  }
   0x1   :  { %s15_s14 = sshll.u32 %s519_s1, 4  ;;  %s17_s16 = sshll.u32 %s428_s15, 4  ;;  %s16_s14 = int_to_ptr.hbm [resolvable:$true] %s15_s14  ;;  %s18_s16 = int_to_ptr.vmem [resolvable:$true] %s17_s16 }
   0x2   :  { %s430_s18 = smov 8  }
   0x3   :  { %23 = dma.hbm_to_vmem [thread:$0]  %s16_s14, 896, %s18_s16, [#allocation3], %s429_s17, %s429_s17, %s430_s18  }
   0x4   :  { %426 = dma.done.wait [#allocation3], 896  }
   0x5   :  { %427 = vsyncadd [#allocation3], 4294966400  ;;  %v43_v0 = vlaneseq  ;;  %vm120_vm0 = vcmask 1041408   ;;  %v40_v2 = vld [vmem:[#allocation2 + $0x30] sm:$0x3]  ;;  %v39_v3 = vld [vmem:[#allocation2 + $0x28] sm:$0xff] }
   0x6   :  { %v458_v4 = vld [vmem:[%s518_s0] sm:$0xff]  ;;  %355 = vmatpush.msk.msra.mxu0 %vm120_vm0, %v40_v2  ;;  %356 = vmatpush.msk.msra.mxu1 %vm120_vm0, %v40_v2  ;;  %v37_v7 = vld [vmem:[#allocation2 + $0x18] sm:$0xff]  ;;  %v36_v8 = vld [vmem:[#allocation2 + $0x10] sm:$0xff]  ;;  %v431_v12 = vmov 0.0   ;;  %vm116_vm1 = vcmask 408576   ;;  %vm323_vm2 = vcmask 402432  }
   0x7   :  { %v44_v1 = vshrl.u32 %v43_v0, 7  ;;  %v42_v5 = vperm.slane %v458_v4, 0  ;;  %v38_v6 = vld [vmem:[#allocation2 + $0x20] sm:$0xff]  ;;  %358 = vmatpush.msk.msra.mxu2 %vm120_vm0, %v40_v2  ;;  %360 = vmatpush.msk.msra.mxu3 %vm120_vm0, %v40_v2  ;;  %v35_v9 = vld [vmem:[#allocation2 + $0x8] sm:$0xff]  ;;  %v49_v10 = vperm.slane %v458_v4, 1  ;;  %v84_v13 = vperm.slane %v458_v4, 6 }
   0x8   :  { %134 = vmatpush.msra.mxu0 %v39_v3  ;;  %159 = vmatpush.msra.mxu1 %v39_v3  ;;  %v34_v11 = vld [vmem:[#allocation2] sm:$0xff]  ;;  %v56_v22 = vperm.slane %v458_v4, 2  ;;  %v63_v23 = vperm.slane %v458_v4, 3  ;;  %v91_v24 = vperm.slane %v458_v4, 7  ;;  %v70_v37 = vperm.slane %v458_v4, 4 }
   0x9   :  { %375 = vset.pattern.permute.xlu0 %v44_v1  ;;  %376 = vset.pattern.permute.xlu1 %v44_v1  ;;  %v474_v14 = vld [vmem:[%s520_s2] ss:$0 sm:$0xff]  ;;  %v480_v17 = vld [vmem:[%s520_s2 + $0x1] ss:$0 sm:$0xff]  ;;  %v77_v38 = vperm.slane %v458_v4, 5  ;;  %vm348_vm5 = vcmask 1024  }
   0xa   :  { %377 = vset.pattern.permute.xlu2 %v44_v1  ;;  %184 = vmatpush.msra.mxu2 %v39_v3  ;;  %v380_v4 = vld [vmem:[%s520_s2 + $0x2] ss:$0 sm:$0xff] }
   0xb   :  { %209 = vmatpush.msra.mxu3 %v39_v3  ;;  %135 = vmatpush.msra.mxu0 %v38_v6 }
   0xc   :  { %160 = vmatpush.msra.mxu1 %v38_v6  ;;  %185 = vmatpush.msra.mxu2 %v38_v6 }
   0xd   :  { %136 = vmatpush.msra.mxu0 %v37_v7  ;;  %210 = vmatpush.msra.mxu3 %v38_v6 }
   0xe   :  { %161 = vmatpush.msra.mxu1 %v37_v7  ;;  %186 = vmatpush.msra.mxu2 %v37_v7 }
   0xf   :  { %137 = vmatpush.msra.mxu0 %v36_v8  ;;  %211 = vmatpush.msra.mxu3 %v37_v7 }
  0x10   :  { %162 = vmatpush.msra.mxu1 %v36_v8  ;;  %187 = vmatpush.msra.mxu2 %v36_v8 }
  0x11   :  { %47 = vperm.xlu0 %375, %v42_v5   ;;  %138 = vmatpush.msra.mxu0 %v35_v9 }
  0x12   :  { %212 = vmatpush.msra.mxu3 %v36_v8  ;;  %163 = vmatpush.msra.mxu1 %v35_v9 }
  0x13   :  { %188 = vmatpush.msra.mxu2 %v35_v9  ;;  %139 = vmatpush.msra.mxu0 %v34_v11 }
  0x14   :  { %140 = vmatmul.f32.vlgmr.msra.gmra.mxu0 %v431_v12  ;;  %164 = vmatpush.msra.mxu1 %v34_v11 }
  0x15   :  { %189 = vmatpush.msra.mxu2 %v34_v11  ;;  %213 = vmatpush.msra.mxu3 %v35_v9 }
  0x16   :  { %362 = vmatpush.msk.msrb.mxu0 %vm120_vm0, %v40_v2  ;;  %364 = vmatpush.msk.msrb.mxu1 %vm120_vm0, %v40_v2 }
  0x17   :  { %214 = vmatpush.msra.mxu3 %v34_v11  ;;  %366 = vmatpush.msk.msrb.mxu2 %vm120_vm0, %v40_v2 }
  0x18   :  { %234 = vmatpush.msrb.mxu0 %v39_v3  ;;  %259 = vmatpush.msrb.mxu1 %v39_v3 }
  0x19   :  { %54 = vperm.xlu0 %375, %v49_v10   ;;  %284 = vmatpush.msrb.mxu2 %v39_v3 }
  0x1a   :  { %368 = vmatpush.msk.msrb.mxu3 %vm120_vm0, %v40_v2  ;;  %235 = vmatpush.msrb.mxu0 %v38_v6 }
  0x1b   :  { %260 = vmatpush.msrb.mxu1 %v38_v6  ;;  %285 = vmatpush.msrb.mxu2 %v38_v6 }
  0x1c   :  { %236 = vmatpush.msrb.mxu0 %v37_v7  ;;  %309 = vmatpush.msrb.mxu3 %v39_v3 }
  0x1d   :  { %261 = vmatpush.msrb.mxu1 %v37_v7  ;;  %286 = vmatpush.msrb.mxu2 %v37_v7 }
  0x1e   :  { %237 = vmatpush.msrb.mxu0 %v36_v8  ;;  %310 = vmatpush.msrb.mxu3 %v38_v6 }
  0x1f   :  { %262 = vmatpush.msrb.mxu1 %v36_v8  ;;  %287 = vmatpush.msrb.mxu2 %v36_v8 }
  0x20   :  { %238 = vmatpush.msrb.mxu0 %v35_v9  ;;  %311 = vmatpush.msrb.mxu3 %v37_v7 }
  0x21   :  { %89 = vperm.xlu0 %375, %v84_v13   ;;  %263 = vmatpush.msrb.mxu1 %v35_v9 }
  0x22   :  { %288 = vmatpush.msrb.mxu2 %v35_v9  ;;  %239 = vmatpush.msrb.mxu0 %v34_v11 }
  0x23   :  { %264 = vmatpush.msrb.mxu1 %v34_v11  ;;  %312 = vmatpush.msrb.mxu3 %v36_v8  ;;  %v381_v8 = vld [vmem:[%s520_s2 + $0x3] ss:$0 sm:$0xff] }
  0x24   :  { %289 = vmatpush.msrb.mxu2 %v34_v11  ;;  %61 = vperm.xlu1 %376, %v56_v22  }
  0x25   :  { %313 = vmatpush.msrb.mxu3 %v35_v9  ;;  %75 = vperm.xlu2 %377, %v70_v37  }
  0x27   :  { %314 = vmatpush.msrb.mxu3 %v34_v11 }
  0x2c   :  { %68 = vperm.xlu1 %376, %v63_v23  }
  0x2d   :  { %82 = vperm.xlu2 %377, %v77_v38  }
  0x34   :  { %96 = vperm.xlu1 %376, %v91_v24  }
  0x7f   :  { %v76_v45 = vpop.permute.xlu2 %75 }
  0x80   :  { %v103_v46 = vmul.f32 %v474_v14, %v76_v45 }
  0x82   :  { %v112_v47 = vadd.f32 %v480_v17, %v103_v46 }
  0x83   :  { %v48_v15 = vpop.permute.xlu0 %47 }
  0x84   :  { %v99_v16 = vmul.f32 %v474_v14, %v48_v15 }
  0x86   :  { %v108_v18 = vadd.f32 %v480_v17, %v99_v16 }
  0x87   :  { %v83_v51 = vpop.permute.xlu2 %82 }
  0x88   :  { %v104_v52 = vmul.f32 %v474_v14, %v83_v51 }
  0x8a   :  { %v113_v53 = vadd.f32 %v480_v17, %v104_v52 }
  0x8b   :  { %v55_v25 = vpop.permute.xlu0 %54 }
  0x8c   :  { %v100_v26 = vmul.f32 %v474_v14, %v55_v25 }
  0x8e   :  { %v109_v27 = vadd.f32 %v480_v17, %v100_v26 }
  0x91   :  { %v141_v19 = vpop.f32.mrf.mxu0 }
  0x92   :  { %v144_v20 = vadd.f32 %v141_v19, %v108_v18 }
  0x93   :  { %v90_v57 = vpop.permute.xlu0 %89 }
  0x94   :  { %382 = vtanh.f32 %v144_v20  ;;  %v105_v58 = vmul.f32 %v474_v14, %v90_v57 }
  0x96   :  { %v62_v31 = vpop.permute.xlu1 %61  ;;  %v114_v59 = vadd.f32 %v480_v17, %v105_v58 }
  0x97   :  { %v101_v32 = vmul.f32 %v474_v14, %v62_v31 }
  0x99   :  { %v110_v33 = vadd.f32 %v480_v17, %v101_v32 }
  0x9a   :  { %v383_v21 = vpop.eup %382 }
  0x9b   :  { %357 = vmatmul.msk.f32.vlgmr.msra.gmra.mxu1 %vm116_vm1, %v383_v21 }
  0x9e   :  { %v69_v39 = vpop.permute.xlu1 %68 }
  0x9f   :  { %v102_v40 = vmul.f32 %v474_v14, %v69_v39 }
  0xa1   :  { %v111_v41 = vadd.f32 %v480_v17, %v102_v40 }
  0xa6   :  { %v97_v63 = vpop.permute.xlu1 %96 }
  0xa7   :  { %v106_v0 = vmul.f32 %v474_v14, %v97_v63 }
  0xa9   :  { %v115_v1 = vadd.f32 %v480_v17, %v106_v0 }
 0x118   :  { %v166_v28 = vpop.f32.mrf.mxu1 }
 0x119   :  { %v169_v29 = vadd.f32 %v166_v28, %v109_v27 }
 0x11b   :  { %384 = vtanh.f32 %v169_v29 }
 0x121   :  { %v385_v30 = vpop.eup %384 }
 0x122   :  { %359 = vmatmul.msk.f32.vlgmr.msra.gmra.mxu2 %vm116_vm1, %v385_v30 }
 0x1a5   :  { %v191_v34 = vpop.f32.mrf.mxu2 }
 0x1a6   :  { %v194_v35 = vadd.f32 %v191_v34, %v110_v33 }
 0x1a8   :  { %386 = vtanh.f32 %v194_v35 }
 0x1ae   :  { %v387_v36 = vpop.eup %386 }
 0x1af   :  { %361 = vmatmul.msk.f32.vlgmr.msra.gmra.mxu3 %vm116_vm1, %v387_v36 }
 0x232   :  { %v216_v42 = vpop.f32.mrf.mxu3 }
 0x233   :  { %v219_v43 = vadd.f32 %v216_v42, %v111_v41 }
 0x235   :  { %388 = vtanh.f32 %v219_v43 }
 0x23b   :  { %v389_v44 = vpop.eup %388 }
 0x23c   :  { %363 = vmatmul.msk.f32.vlgmr.msrb.gmra.mxu0 %vm116_vm1, %v389_v44 }
 0x2b9   :  { %v241_v48 = vpop.f32.mrf.mxu0 }
 0x2ba   :  { %v244_v49 = vadd.f32 %v241_v48, %v112_v47 }
 0x2bc   :  { %390 = vtanh.f32 %v244_v49 }
 0x2c2   :  { %v391_v50 = vpop.eup %390 }
 0x2c3   :  { %365 = vmatmul.msk.f32.vlgmr.msrb.gmra.mxu1 %vm116_vm1, %v391_v50 }
 0x340   :  { %v266_v54 = vpop.f32.mrf.mxu1 }
 0x341   :  { %v269_v55 = vadd.f32 %v266_v54, %v113_v53 }
 0x343   :  { %392 = vtanh.f32 %v269_v55 }
 0x349   :  { %v393_v56 = vpop.eup %392 }
 0x34a   :  { %367 = vmatmul.msk.f32.vlgmr.msrb.gmra.mxu2 %vm116_vm1, %v393_v56 }
 0x3cd   :  { %v291_v60 = vpop.f32.mrf.mxu2 }
 0x3ce   :  { %v294_v61 = vadd.f32 %v291_v60, %v114_v59 }
 0x3d0   :  { %394 = vtanh.f32 %v294_v61 }
 0x3d6   :  { %v395_v62 = vpop.eup %394 }
 0x3d7   :  { %369 = vmatmul.msk.f32.vlgmr.msrb.gmra.mxu3 %vm116_vm1, %v395_v62 }
 0x45a   :  { %v316_v2 = vpop.f32.mrf.mxu3 }
 0x45b   :  { %v319_v3 = vadd.f32 %v316_v2, %v115_v1 }
 0x45d   :  { %396 = vtanh.f32 %v319_v3 }
 0x463   :  { %v397_v5 = vpop.eup %396 }
 0x464   :  { %v322_v6 = vmul.f32 %v397_v5, %v380_v4 }
 0x466   :  { %v324_v7 = vsel %vm323_vm2, %v322_v6, 0.0 }
 0x467   :  { %325 = vadd.xlane.f32.xlu2 %v324_v7 }
 0x4da   :  { %v326_v9 = vpop.xlane.xlu2 %325 }
 0x4db   :  { %v328_v10 = vadd.f32 %v381_v8, %v326_v9 }
 0x4dd   :  { %v370_v11 = vmul.f32 -1.442695, %v328_v10 }
 0x4df   :  { %398 = vpow2.f32 %v370_v11 }
 0x4e5   :  { %v399_v12 = vpop.eup %398 }
 0x4e6   :  { %v332_v13 = vadd.f32 1.0, %v399_v12 }
 0x4e8   :  { %400 = vrcp.f32 %v332_v13  ;;  %v344_v17 = vand.u32 2147483648, %v332_v13  ;;  %v342_v19 = vand.u32 2147483647, %v332_v13  ;;  %vm338_vm4 = vweird.f32 %v332_v13 }
 0x4ea   :  { %v345_v21 = vor.u32 1.1754944e-38, %v344_v17  ;;  %vm343_vm7 = vcmp.eq.f32.partialorder %v342_v19, 8.507059e+37 }
 0x4ee   :  { %v401_v14 = vpop.eup %400 }
 0x4ef   :  { %v334_v15 = vmul.f32 %v401_v14, %v332_v13  ;;  %vm339_vm3 = vweird.f32 %v401_v14 }
 0x4f0   :  { %vm340_vm6 = vmor %vm338_vm4, %vm339_vm3 }
 0x4f1   :  { %v335_v16 = vsub.f32 1.0, %v334_v15 }
 0x4f3   :  { %v336_v18 = vmul.f32 %v401_v14, %v335_v16 }
 0x4f5   :  { %v337_v20 = vadd.f32 %v401_v14, %v336_v18 }
 0x4f7   :  { %v341_v22 = vsel %vm340_vm6, %v401_v14, %v337_v20 }
 0x4f8   :  { %v346_v23 = vsel %vm343_vm7, %v345_v21, %v341_v22 }
 0x4f9   :  { %349 = vst.msk [vmem:[%s521_s3] sm:$0x3] %vm348_vm5, %v346_v23 }
 0x4fa   :  { %354 = vsyncpa [#allocation3], 1 }

</bundles_post_ra>
